<compile_context>
chip_gen: v5e
topology: v5e:2x2
jax: 0.10.0
libtpu: 0.0.40
codegen_flags: <defaults>
</compile_context>

<pallas_src>
from functools import partial

import numpy as np
import jax
import jax.numpy as jnp
from jax.experimental import pallas as pl
from jax.experimental.pallas import tpu as pltpu

KH = KW = 3
CIN_PAD = 16          # pad input channels to a full bf16 sublane group


# ----------------------------------------------------------------------------------
# Fused Pallas kernel: conv2+bn2+relu  ->  (conv1+bn1) + (conv_s+bn_s)  + relu
# (stage-2 x2 upsample already folded into the weights; everything at H x W resolution)
# ----------------------------------------------------------------------------------
def _block_kernel(x_ref, w1_ref, b1_ref, w2_ref, b2_ref, mask_ref, o_ref, ypad_ref,
                  *, wp, s1_len, out_len):
    """Refs:
      x_ref:    (1, CIN_PAD, LP)   zero-padded, row-flattened input (bf16)
      w1_ref:   (16, 9*CIN_PAD)    stage-1 merged conv2+bn2 weights (bf16)
      b1_ref:   (16, 1)            stage-1 folded bias (f32)
      w2_ref:   (16, 2*9*CIN_PAD)  stage-2 merged (4 phases x planes, both branches) (bf16)
      b2_ref:   (16, 1)            stage-2 folded bias (f32)
      mask_ref: (1, s1_len)        1.0 on valid columns, 0.0 on row-wrap junk (f32)
      o_ref:    (1, 16, out_len)   phase-major output (f32); cols >= s1_len are junk
      ypad_ref: (CIN_PAD, LP)      VMEM scratch: zero-padded flat y1
    """
    x = x_ref[0]                                     # (CIN_PAD, LP)

    def im2col(src, width):
        cols = []
        for dy in range(KH):
            for dx in range(KW):
                off = dy * wp + dx                   # static lane offset per tap
                cols.append(src[:, off:off + width])
        return jnp.concatenate(cols, axis=0)         # (9*CIN_PAD, width)

    # ---- stage 1: y1 = relu(bn2(conv2(x))), single MXU matmul ------------------
    y1 = jnp.dot(w1_ref[...], im2col(x, s1_len), preferred_element_type=jnp.float32)
    y1 = jnp.maximum(y1 + b1_ref[...], 0.0) * mask_ref[...]   # zero row-wrap junk cols

    # ---- embed y1 into the zero-padded flat layout used by the stage-2 im2col --
    ypad_ref[...] = jnp.zeros_like(ypad_ref)
    ypad_ref[:, wp + 1:wp + 1 + s1_len] = y1.astype(ypad_ref.dtype)
    yp = ypad_ref[...]

    # ---- stage 2: both ResizeConv2d branches merged along K, single matmul -----
    col2 = jnp.concatenate([im2col(yp, out_len), im2col(x, out_len)], axis=0)
    acc = jnp.dot(w2_ref[...], col2, preferred_element_type=jnp.float32)
    acc = jnp.maximum(acc + b2_ref[...], 0.0)
    o_ref[0] = acc.astype(o_ref.dtype)


def _fused_block(xflat, w1, b1, w2, b2, mask, *, wp, s1_len, out_len):
    n, cin_p, lp = xflat.shape
    cout = w2.shape[0]
    kernel = partial(_block_kernel, wp=wp, s1_len=s1_len, out_len=out_len)
    return pl.pallas_call(
        kernel,
        out_shape=jax.ShapeDtypeStruct((n, cout, out_len), jnp.float32),
        grid_spec=pltpu.PrefetchScalarGridSpec(
            num_scalar_prefetch=0,
            grid=(n,),
            in_specs=[
                pl.BlockSpec((1, cin_p, lp), lambda i: (i, 0, 0)),
                pl.BlockSpec(w1.shape, lambda i: (0, 0)),
                pl.BlockSpec(b1.shape, lambda i: (0, 0)),
                pl.BlockSpec(w2.shape, lambda i: (0, 0)),
                pl.BlockSpec(b2.shape, lambda i: (0, 0)),
                pl.BlockSpec(mask.shape, lambda i: (0, 0)),
            ],
            out_specs=pl.BlockSpec((1, cout, out_len), lambda i: (i, 0, 0)),
            scratch_shapes=[pltpu.VMEM((cin_p, lp), jnp.bfloat16)],
        ),
        compiler_params=pltpu.CompilerParams(
            dimension_semantics=("parallel",),   # 2-way split -> both v7x TensorCores
        ),
    )(xflat, w1, b1, w2, b2, mask)


# ----------------------------------------------------------------------------------
# One-time parameter preparation (hoisted OUT of the per-call jitted forward)
# ----------------------------------------------------------------------------------
def _fold_bn(w, b, gamma, beta, mean, var, eps):
    scale = gamma / jnp.sqrt(var + eps)
    w_f = w * scale[:, None, None, None]
    b_in = jnp.zeros_like(mean) if b is None else b
    b_f = (b_in - mean) * scale + beta
    return w_f, b_f


def _merge_taps(w):
    """(Cout, Cin, 3, 3) -> (Cout, 9*Cin); tap-major, channel-minor (matches im2col)."""
    co, ci, kh, kw = w.shape
    return jnp.transpose(w, (0, 2, 3, 1)).reshape(co, kh * kw * ci)


def _pad_cin(w, cin_p):
    return jnp.pad(w, ((0, 0), (0, cin_p - w.shape[1]), (0, 0), (0, 0)))


# Polyphase ("sub-pixel") decomposition of nearest-x2 upsample followed by a 3x3 conv
# (pad 1): output phase (py, px) at the ORIGINAL resolution is a 3x3 conv on the
# zero-padded original-resolution input with these tap-summing matrices.
_A = (np.array([[1., 0., 0.], [0., 1., 1.], [0., 0., 0.]], np.float32),   # phase 0
      np.array([[0., 0., 0.], [1., 1., 0.], [0., 0., 1.]], np.float32))   # phase 1


def _phase_weights(w):
    """(Cout, Cin, 3, 3) -> (4*Cout, Cin, 3, 3); rows ordered (py, px)-major, plane-minor."""
    phases = [jnp.einsum('da,eb,ocab->ocde', _A[py], _A[px], w)
              for py in range(2) for px in range(2)]
    return jnp.concatenate(phases, axis=0)


def prepare_basic_block_dec(p, *, eps=1e-5, cin_pad=CIN_PAD):
    """Fold eval-mode BN into conv weights, fold the x2 nearest upsample into the stage-2
    weights (polyphase), merge taps + both stage-2 branches along K, pad channels to full
    bf16 sublane groups, and cast.  Parameter math only; run once."""
    cin = p["conv2_w"].shape[1]

    w2f, b2f = _fold_bn(p["conv2_w"], None, p["bn2_gamma"], p["bn2_beta"],
                        p["bn2_mean"], p["bn2_var"], eps)
    w1f, b1f = _fold_bn(p["conv1_w"], p["conv1_b"], p["bn1_gamma"], p["bn1_beta"],
                        p["bn1_mean"], p["bn1_var"], eps)
    wsf, bsf = _fold_bn(p["sc_w"], p["sc_b"], p["bns_gamma"], p["bns_beta"],
                        p["bns_mean"], p["bns_var"], eps)

    # stage 1 (conv2 + bn2): pad Cin and Cout to cin_pad (zero rows give zero y1 channels)
    w_s1_4d = jnp.pad(_pad_cin(w2f, cin_pad),
                      ((0, cin_pad - w2f.shape[0]), (0, 0), (0, 0), (0, 0)))
    w_s1 = _merge_taps(w_s1_4d).astype(jnp.bfloat16)                       # (16, 9*16)
    b_s1 = jnp.pad(b2f, (0, cin_pad - b2f.shape[0])).reshape(-1, 1).astype(jnp.float32)

    # stage 2: both ResizeConv2d branches, 4 phases each; outputs add so biases add.
    wy = _merge_taps(_phase_weights(_pad_cin(w1f, cin_pad)))               # (16, 144)
    wx = _merge_taps(_phase_weights(_pad_cin(wsf, cin_pad)))               # (16, 144)
    w_s2 = jnp.concatenate([wy, wx], axis=1).astype(jnp.bfloat16)          # (16, 288)
    b_s2 = jnp.tile(b1f + bsf, 4).reshape(-1, 1).astype(jnp.float32)       # (16, 1)

    return dict(w_s1=w_s1, b_s1=b_s1, w_s2=w_s2, b_s2=b_s2)


# ----------------------------------------------------------------------------------
# Forward (thin, jit-friendly): pad/flatten input -> fused kernel -> crop + phase->space
# ----------------------------------------------------------------------------------
def basic_block_dec_forward(x, prep, *, stride=2):
    """BasicBlockDec.forward, stride==2 (ResizeConv2d) path, fully fused in one kernel."""
    # TODO(synk): stride==1 variant (plain conv1 + identity shortcut) is not wired here.
    assert stride == 2, "only the stride=2 (ResizeConv2d) decoder block is implemented"
    n, cin, h, w = x.shape
    planes = prep["w_s2"].shape[0] // 4
    pad = 1
    hp, wp = h + 2 * pad, w + 2 * pad

    s1_len = h * wp                                        # per-phase flat output length
    out_len = ((s1_len + 127) // 128) * 128                # lane-dense output (mult of 128)
    max_off = (KH - 1) * wp + (KW - 1)                     # largest im2col lane offset
    lp = ((max_off + out_len + 127) // 128) * 128          # flat input length (mult of 128)

    # one fused XLA copy: cast + channel pad + spatial zero-pad + row-flatten + lane pad
    xb = x.astype(jnp.bfloat16)
    xp = jnp.pad(xb, ((0, 0), (0, CIN_PAD - cin), (pad, pad), (pad, pad)))
    xflat = jnp.pad(xp.reshape(n, CIN_PAD, hp * wp), ((0, 0), (0, 0), (0, lp - hp * wp)))

    # compile-time constant mask for the row-wrap junk columns of the flattened maps
    mask = jnp.asarray((np.arange(s1_len) % wp < w).astype(np.float32)[None, :])

    out_full = _fused_block(xflat, prep["w_s1"], prep["b_s1"], prep["w_s2"], prep["b_s2"],
                            mask, wp=wp, s1_len=s1_len, out_len=out_len)   # (N, 16, out_len)

    # crop junk columns + phase -> spatial interleave (depth-to-space), one fused XLA op
    out = out_full[:, :, :s1_len].reshape(n, 2, 2, planes, h, wp)[..., :w]
    out = out.transpose(0, 3, 4, 1, 5, 2).reshape(n, planes, stride * h, stride * w)
    return out


# ----------------------------------------------------------------------------------
# Pure-JAX f32 reference (module semantics, eval-mode BN) + demo
# ----------------------------------------------------------------------------------
def reference_forward(x, p, *, stride=2, eps=1e-5):
    def bn(h_, g, b, m, v):
        s = (g / jnp.sqrt(v + eps))[None, :, None, None]
        return (h_ - m[None, :, None, None]) * s + b[None, :, None, None]

    def conv(h_, w_, b_=None):
        o = jax.lax.conv_general_dilated(h_, w_, (1, 1), ((1, 1), (1, 1)),
                                         dimension_numbers=("NCHW", "OIHW", "NCHW"))
        return o if b_ is None else o + b_[None, :, None, None]

    def up(h_):
        return jnp.repeat(jnp.repeat(h_, stride, axis=2), stride, axis=3)

    out = jax.nn.relu(bn(conv(x, p["conv2_w"]),
                         p["bn2_gamma"], p["bn2_beta"], p["bn2_mean"], p["bn2_var"]))
    out = bn(conv(up(out), p["conv1_w"], p["conv1_b"]),
             p["bn1_gamma"], p["bn1_beta"], p["bn1_mean"], p["bn1_var"])
    out = out + bn(conv(up(x), p["sc_w"], p["sc_b"]),
                   p["bns_gamma"], p["bns_beta"], p["bns_mean"], p["bns_var"])
    return jax.nn.relu(out)


if __name__ == "__main__":
    N, IN_PLANES, H, W = 2, 8, 16, 16
    STRIDE = 2
    PLANES = IN_PLANES // STRIDE
    f32 = jnp.float32

    key = jax.random.PRNGKey(0)
    ks = jax.random.split(key, 12)
    x = jax.random.normal(ks[0], (N, IN_PLANES, H, W), dtype=f32)

    def bn_params(k, c):
        k1, k2, k3, k4 = jax.random.split(k, 4)
        return dict(gamma=1.0 + 0.1 * jax.random.normal(k1, (c,), f32),
                    beta=0.1 * jax.random.normal(k2, (c,), f32),
                    mean=0.1 * jax.random.normal(k3, (c,), f32),
                    var=1.0 + 0.1 * jax.random.uniform(k4, (c,), f32))

    bn2 = bn_params(ks[1], IN_PLANES)
    bn1 = bn_params(ks[2], PLANES)
    bns = bn_params(ks[3], PLANES)
    p = dict(
        conv2_w=0.1 * jax.random.normal(ks[4], (IN_PLANES, IN_PLANES, 3, 3), f32),
        conv1_w=0.1 * jax.random.normal(ks[5], (PLANES, IN_PLANES, 3, 3), f32),
        conv1_b=0.1 * jax.random.normal(ks[6], (PLANES,), f32),
        sc_w=0.1 * jax.random.normal(ks[7], (PLANES, IN_PLANES, 3, 3), f32),
        sc_b=0.1 * jax.random.normal(ks[8], (PLANES,), f32),
        bn2_gamma=bn2["gamma"], bn2_beta=bn2["beta"], bn2_mean=bn2["mean"], bn2_var=bn2["var"],
        bn1_gamma=bn1["gamma"], bn1_beta=bn1["beta"], bn1_mean=bn1["mean"], bn1_var=bn1["var"],
        bns_gamma=bns["gamma"], bns_beta=bns["beta"], bns_mean=bns["mean"], bns_var=bns["var"],
    )

    # Parameter folding runs ONCE, outside the per-call jitted forward.
    prep = prepare_basic_block_dec(p)
    prep = jax.tree_util.tree_map(jax.block_until_ready, prep)

    fwd = jax.jit(partial(basic_block_dec_forward, stride=STRIDE))
    out = jax.block_until_ready(fwd(x, prep))
    assert out.shape == (N, PLANES, H * STRIDE, W * STRIDE)

    ref = reference_forward(x, p, stride=STRIDE)
    # bf16 activations/weights with f32 accumulation vs. f32 reference -> loose tol.
    assert jnp.allclose(out, ref, atol=7e-2, rtol=7e-2), float(jnp.max(jnp.abs(out - ref)))

    print("KERNEL_OK")
</pallas_src>

<mosaic_0001>
module attributes {stable_mosaic.version = 11 : i64} {
  func.func @_block_kernel(%arg0: i32, %arg1: memref<1x16x512xbf16, #tpu.memory_space<vmem>>, %arg2: memref<16x144xbf16, #tpu.memory_space<vmem>>, %arg3: memref<16x1xf32, #tpu.memory_space<vmem>>, %arg4: memref<16x288xbf16, #tpu.memory_space<vmem>>, %arg5: memref<16x1xf32, #tpu.memory_space<vmem>>, %arg6: memref<1x288xf32, #tpu.memory_space<vmem>>, %arg7: memref<1x16x384xf32, #tpu.memory_space<vmem>>, %arg8: memref<16x512xbf16, #tpu.memory_space<vmem>>) attributes {dimension_semantics = [#tpu.dimension_semantics<parallel>], iteration_bounds = array<i64: 2>, scalar_prefetch = 0 : i64, scratch_operands = 1 : i64, tpu.core_type = #tpu.core_type<tc>, window_params = [{transform_indices = @transform_0, window_bounds = array<i64: 1, 16, 512>}, {pipeline_mode = #tpu.pipeline_mode<synchronous>, transform_indices = @transform_1, window_bounds = array<i64: 16, 144>}, {pipeline_mode = #tpu.pipeline_mode<synchronous>, transform_indices = @transform_2, window_bounds = array<i64: 16, 1>}, {pipeline_mode = #tpu.pipeline_mode<synchronous>, transform_indices = @transform_3, window_bounds = array<i64: 16, 288>}, {pipeline_mode = #tpu.pipeline_mode<synchronous>, transform_indices = @transform_4, window_bounds = array<i64: 16, 1>}, {pipeline_mode = #tpu.pipeline_mode<synchronous>, transform_indices = @transform_5, window_bounds = array<i64: 1, 288>}, {transform_indices = @transform_6, window_bounds = array<i64: 1, 16, 384>}]} {
    %c0 = arith.constant 0 : index
    %c0_0 = arith.constant 0 : index
    %c0_1 = arith.constant 0 : index
    %0 = vector.load %arg1[%c0, %c0_0, %c0_1] : memref<1x16x512xbf16, #tpu.memory_space<vmem>>, vector<1x16x512xbf16>
    %1 = vector.shape_cast %0 : vector<1x16x512xbf16> to vector<16x512xbf16>
    %c0_2 = arith.constant 0 : index
    %c0_3 = arith.constant 0 : index
    %2 = vector.load %arg2[%c0_2, %c0_3] : memref<16x144xbf16, #tpu.memory_space<vmem>>, vector<16x144xbf16>
    %3 = vector.extract_strided_slice %1 {offsets = [0, 0], sizes = [16, 288], strides = [1, 1]} : vector<16x512xbf16> to vector<16x288xbf16>
    %4 = vector.extract_strided_slice %1 {offsets = [0, 1], sizes = [16, 288], strides = [1, 1]} : vector<16x512xbf16> to vector<16x288xbf16>
    %5 = vector.extract_strided_slice %1 {offsets = [0, 2], sizes = [16, 288], strides = [1, 1]} : vector<16x512xbf16> to vector<16x288xbf16>
    %6 = vector.extract_strided_slice %1 {offsets = [0, 18], sizes = [16, 288], strides = [1, 1]} : vector<16x512xbf16> to vector<16x288xbf16>
    %7 = vector.extract_strided_slice %1 {offsets = [0, 19], sizes = [16, 288], strides = [1, 1]} : vector<16x512xbf16> to vector<16x288xbf16>
    %8 = vector.extract_strided_slice %1 {offsets = [0, 20], sizes = [16, 288], strides = [1, 1]} : vector<16x512xbf16> to vector<16x288xbf16>
    %9 = vector.extract_strided_slice %1 {offsets = [0, 36], sizes = [16, 288], strides = [1, 1]} : vector<16x512xbf16> to vector<16x288xbf16>
    %10 = vector.extract_strided_slice %1 {offsets = [0, 37], sizes = [16, 288], strides = [1, 1]} : vector<16x512xbf16> to vector<16x288xbf16>
    %11 = vector.extract_strided_slice %1 {offsets = [0, 38], sizes = [16, 288], strides = [1, 1]} : vector<16x512xbf16> to vector<16x288xbf16>
    %12 = tpu.concatenate %3, %4, %5, %6, %7, %8, %9, %10, %11 in 0 : vector<16x288xbf16>, vector<16x288xbf16>, vector<16x288xbf16>, vector<16x288xbf16>, vector<16x288xbf16>, vector<16x288xbf16>, vector<16x288xbf16>, vector<16x288xbf16>, vector<16x288xbf16> -> vector<144x288xbf16>
    %cst = arith.constant dense<0.000000e+00> : vector<16x288xf32>
    %13 = tpu.matmul %2, %12, %cst {dimension_numbers = #tpu.dot_dimension_numbers<[1], [0], [0], [1], [0, 0, 1, 1], [], []>} : vector<16x144xbf16>, vector<144x288xbf16>, vector<16x288xf32> -> vector<16x288xf32>
    %c0_4 = arith.constant 0 : index
    %c0_5 = arith.constant 0 : index
    %14 = vector.load %arg3[%c0_4, %c0_5] : memref<16x1xf32, #tpu.memory_space<vmem>>, vector<16x1xf32>
    %15 = vector.broadcast %14 : vector<16x1xf32> to vector<16x288xf32>
    %16 = arith.addf %13, %15 : vector<16x288xf32>
    %cst_6 = arith.constant 0.000000e+00 : f32
    %17 = vector.broadcast %cst_6 : f32 to vector<16x288xf32>
    %18 = arith.maximumf %16, %17 : vector<16x288xf32>
    %c0_7 = arith.constant 0 : index
    %c0_8 = arith.constant 0 : index
    %19 = vector.load %arg6[%c0_7, %c0_8] : memref<1x288xf32, #tpu.memory_space<vmem>>, vector<1x288xf32>
    %20 = vector.broadcast %19 : vector<1x288xf32> to vector<16x288xf32>
    %21 = arith.mulf %18, %20 : vector<16x288xf32>
    %cst_9 = arith.constant 0.000000e+00 : bf16
    %22 = vector.broadcast %cst_9 : bf16 to vector<16x512xbf16>
    %c0_10 = arith.constant 0 : index
    %c0_11 = arith.constant 0 : index
    %23 = vector.load %arg8[%c0_10, %c0_11] : memref<16x512xbf16, #tpu.memory_space<vmem>>, vector<16x512xbf16>
    tpu.vector_store %arg8[%c0_10, %c0_11], %22 {strides = array<i32>} : memref<16x512xbf16, #tpu.memory_space<vmem>>, vector<16x512xbf16>,
    %24 = arith.truncf %21 : vector<16x288xf32> to vector<16x288xbf16>
    %c0_12 = arith.constant 0 : index
    %c19 = arith.constant 19 : index
    %25 = vector.load %arg8[%c0_12, %c19] : memref<16x512xbf16, #tpu.memory_space<vmem>>, vector<16x288xbf16>
    tpu.vector_store %arg8[%c0_12, %c19], %24 {strides = array<i32>} : memref<16x512xbf16, #tpu.memory_space<vmem>>, vector<16x288xbf16>,
    %c0_13 = arith.constant 0 : index
    %c0_14 = arith.constant 0 : index
    %26 = vector.load %arg8[%c0_13, %c0_14] : memref<16x512xbf16, #tpu.memory_space<vmem>>, vector<16x512xbf16>
    %27 = vector.extract_strided_slice %26 {offsets = [0, 0], sizes = [16, 384], strides = [1, 1]} : vector<16x512xbf16> to vector<16x384xbf16>
    %28 = vector.extract_strided_slice %26 {offsets = [0, 1], sizes = [16, 384], strides = [1, 1]} : vector<16x512xbf16> to vector<16x384xbf16>
    %29 = vector.extract_strided_slice %26 {offsets = [0, 2], sizes = [16, 384], strides = [1, 1]} : vector<16x512xbf16> to vector<16x384xbf16>
    %30 = vector.extract_strided_slice %26 {offsets = [0, 18], sizes = [16, 384], strides = [1, 1]} : vector<16x512xbf16> to vector<16x384xbf16>
    %31 = vector.extract_strided_slice %26 {offsets = [0, 19], sizes = [16, 384], strides = [1, 1]} : vector<16x512xbf16> to vector<16x384xbf16>
    %32 = vector.extract_strided_slice %26 {offsets = [0, 20], sizes = [16, 384], strides = [1, 1]} : vector<16x512xbf16> to vector<16x384xbf16>
    %33 = vector.extract_strided_slice %26 {offsets = [0, 36], sizes = [16, 384], strides = [1, 1]} : vector<16x512xbf16> to vector<16x384xbf16>
    %34 = vector.extract_strided_slice %26 {offsets = [0, 37], sizes = [16, 384], strides = [1, 1]} : vector<16x512xbf16> to vector<16x384xbf16>
    %35 = vector.extract_strided_slice %26 {offsets = [0, 38], sizes = [16, 384], strides = [1, 1]} : vector<16x512xbf16> to vector<16x384xbf16>
    %36 = tpu.concatenate %27, %28, %29, %30, %31, %32, %33, %34, %35 in 0 : vector<16x384xbf16>, vector<16x384xbf16>, vector<16x384xbf16>, vector<16x384xbf16>, vector<16x384xbf16>, vector<16x384xbf16>, vector<16x384xbf16>, vector<16x384xbf16>, vector<16x384xbf16> -> vector<144x384xbf16>
    %37 = vector.extract_strided_slice %1 {offsets = [0, 0], sizes = [16, 384], strides = [1, 1]} : vector<16x512xbf16> to vector<16x384xbf16>
    %38 = vector.extract_strided_slice %1 {offsets = [0, 1], sizes = [16, 384], strides = [1, 1]} : vector<16x512xbf16> to vector<16x384xbf16>
    %39 = vector.extract_strided_slice %1 {offsets = [0, 2], sizes = [16, 384], strides = [1, 1]} : vector<16x512xbf16> to vector<16x384xbf16>
    %40 = vector.extract_strided_slice %1 {offsets = [0, 18], sizes = [16, 384], strides = [1, 1]} : vector<16x512xbf16> to vector<16x384xbf16>
    %41 = vector.extract_strided_slice %1 {offsets = [0, 19], sizes = [16, 384], strides = [1, 1]} : vector<16x512xbf16> to vector<16x384xbf16>
    %42 = vector.extract_strided_slice %1 {offsets = [0, 20], sizes = [16, 384], strides = [1, 1]} : vector<16x512xbf16> to vector<16x384xbf16>
    %43 = vector.extract_strided_slice %1 {offsets = [0, 36], sizes = [16, 384], strides = [1, 1]} : vector<16x512xbf16> to vector<16x384xbf16>
    %44 = vector.extract_strided_slice %1 {offsets = [0, 37], sizes = [16, 384], strides = [1, 1]} : vector<16x512xbf16> to vector<16x384xbf16>
    %45 = vector.extract_strided_slice %1 {offsets = [0, 38], sizes = [16, 384], strides = [1, 1]} : vector<16x512xbf16> to vector<16x384xbf16>
    %46 = tpu.concatenate %37, %38, %39, %40, %41, %42, %43, %44, %45 in 0 : vector<16x384xbf16>, vector<16x384xbf16>, vector<16x384xbf16>, vector<16x384xbf16>, vector<16x384xbf16>, vector<16x384xbf16>, vector<16x384xbf16>, vector<16x384xbf16>, vector<16x384xbf16> -> vector<144x384xbf16>
    %47 = tpu.concatenate %36, %46 in 0 : vector<144x384xbf16>, vector<144x384xbf16> -> vector<288x384xbf16>
    %c0_15 = arith.constant 0 : index
    %c0_16 = arith.constant 0 : index
    %48 = vector.load %arg4[%c0_15, %c0_16] : memref<16x288xbf16, #tpu.memory_space<vmem>>, vector<16x288xbf16>
    %cst_17 = arith.constant dense<0.000000e+00> : vector<16x384xf32>
    %49 = tpu.matmul %48, %47, %cst_17 {dimension_numbers = #tpu.dot_dimension_numbers<[1], [0], [0], [1], [0, 0, 1, 1], [], []>} : vector<16x288xbf16>, vector<288x384xbf16>, vector<16x384xf32> -> vector<16x384xf32>
    %c0_18 = arith.constant 0 : index
    %c0_19 = arith.constant 0 : index
    %50 = vector.load %arg5[%c0_18, %c0_19] : memref<16x1xf32, #tpu.memory_space<vmem>>, vector<16x1xf32>
    %51 = vector.broadcast %50 : vector<16x1xf32> to vector<16x384xf32>
    %52 = arith.addf %49, %51 : vector<16x384xf32>
    %cst_20 = arith.constant 0.000000e+00 : f32
    %53 = vector.broadcast %cst_20 : f32 to vector<16x384xf32>
    %54 = arith.maximumf %52, %53 : vector<16x384xf32>
    %c0_21 = arith.constant 0 : index
    %c0_22 = arith.constant 0 : index
    %c0_23 = arith.constant 0 : index
    %55 = vector.load %arg7[%c0_21, %c0_22, %c0_23] : memref<1x16x384xf32, #tpu.memory_space<vmem>>, vector<1x16x384xf32>
    %56 = vector.shape_cast %55 : vector<1x16x384xf32> to vector<16x384xf32>
    %57 = vector.shape_cast %54 : vector<16x384xf32> to vector<1x16x384xf32>
    tpu.vector_store %arg7[%c0_21, %c0_22, %c0_23], %57 {strides = array<i32>} : memref<1x16x384xf32, #tpu.memory_space<vmem>>, vector<1x16x384xf32>,
    return
  }
  func.func @transform_0(%arg0: i32) -> (i32, i32, i32) {
    %c0_i32 = arith.constant 0 : i32
    %c0_i32_0 = arith.constant 0 : i32
    %c0_i32_1 = arith.constant 0 : i32
    return %arg0, %c0_i32, %c0_i32_0 : i32, i32, i32
  }
  func.func @transform_1(%arg0: i32) -> (i32, i32) {
    %c0_i32 = arith.constant 0 : i32
    %c0_i32_0 = arith.constant 0 : i32
    %c0_i32_1 = arith.constant 0 : i32
    return %c0_i32, %c0_i32_0 : i32, i32
  }
  func.func @transform_2(%arg0: i32) -> (i32, i32) {
    %c0_i32 = arith.constant 0 : i32
    %c0_i32_0 = arith.constant 0 : i32
    %c0_i32_1 = arith.constant 0 : i32
    return %c0_i32, %c0_i32_0 : i32, i32
  }
  func.func @transform_3(%arg0: i32) -> (i32, i32) {
    %c0_i32 = arith.constant 0 : i32
    %c0_i32_0 = arith.constant 0 : i32
    %c0_i32_1 = arith.constant 0 : i32
    return %c0_i32, %c0_i32_0 : i32, i32
  }
  func.func @transform_4(%arg0: i32) -> (i32, i32) {
    %c0_i32 = arith.constant 0 : i32
    %c0_i32_0 = arith.constant 0 : i32
    %c0_i32_1 = arith.constant 0 : i32
    return %c0_i32, %c0_i32_0 : i32, i32
  }
  func.func @transform_5(%arg0: i32) -> (i32, i32) {
    %c0_i32 = arith.constant 0 : i32
    %c0_i32_0 = arith.constant 0 : i32
    %c0_i32_1 = arith.constant 0 : i32
    return %c0_i32, %c0_i32_0 : i32, i32
  }
  func.func @transform_6(%arg0: i32) -> (i32, i32, i32) {
    %c0_i32 = arith.constant 0 : i32
    %c0_i32_0 = arith.constant 0 : i32
    %c0_i32_1 = arith.constant 0 : i32
    return %arg0, %c0_i32, %c0_i32_0 : i32, i32, i32
  }
}

</mosaic_0001>

<bundles_post_ra>
// kernel: basic_block_dec_forward.1
= control target key start
LH: loop header
LB: loop body
LE: loop exit
PB: predicated region body
PF: predicated region fallthrough
CT: control target
= control target key end

     0   :  { %s1094_s21 = smov 0   ;;  %s1480_s0 = inlined_call_operand.vmem [shape: bf16[2,16,512], index: 0, kind: input, shape index: {}]   ;;  %s1481_s1 = inlined_call_operand.vmem [shape: bf16[16,144], index: 1, kind: input, shape index: {}]   ;;  %s1482_s2 = inlined_call_operand.vmem [shape: f32[16,1], index: 2, kind: input, shape index: {}]   ;;  %s1483_s3 = inlined_call_operand.vmem [shape: bf16[16,288], index: 3, kind: input, shape index: {}]   ;;  %s1484_s4 = inlined_call_operand.vmem [shape: f32[16,1], index: 4, kind: input, shape index: {}]   ;;  %s1485_s5 = inlined_call_operand.vmem [shape: f32[1,288], index: 5, kind: input, shape index: {}]   ;;  %s1486_s6 = inlined_call_operand.vmem [shape: f32[2,16,384], index: 6, kind: output, shape index: {}]  }
   0x1 LB: > { %s937_s22 = sadd.s32 4294967295, %s1047_s21   ;;  %p941_p0 = scmp.ge.s32.totalorder %s1047_s21, 1  ;;  %s1047_s21 = sphi %s1094_s21, %s16_s21  }
   0x2   : > { %p212_p1 = scmp.lt.s32.totalorder %s1047_s21, 3 }
   0x4   : > { %p213_p2 = pnand %p941_p0, %p212_p1 }
   0x5   : > { %p242_p3 = scmp.lt.s32.totalorder (!%p213_p2), %s937_s22, 1  ;;  %s1049_s27 = smov (!%p213_p2), 91  }
   0x6   : > { %216 = sbr.rel (%p213_p2) target bundleno = 829 (0x33d), region = 44  ;;  %s1050_s28 = smov (!%p213_p2), 92  }
   0x7   : > { %s1051_s29 = smov (!%p213_p2), 108   ;;  %s1052_s30 = smov (!%p213_p2), 109  }
   0x8   : > { %s1053_s7 = smov (!%p213_p2), 90   ;;  %s1054_s8 = smov (!%p213_p2), 110  }
   0x9   : > { %s1055_s9 = smov (!%p213_p2), 126   ;;  %s1056_s10 = smov (!%p213_p2), 127  }
   0xa   : > { %s1058_s12 = smov (!%p213_p2), 19  }
   0xb   : > { %s1488_s22 = smov (!%p242_p3, %s937_s22), 1  ;;  %vm353_vm0 = vcmask 744448   ;;  %vm341_vm1 = vcmask 752640   ;;  %vm365_vm2 = vcmask 736256   ;;  %v1010_v26 = vld [vmem:[%s1481_s1 + $0x4] sm:$0xf] }
   0xc   : > { %s1005_s23 = sshll.u32 %s1488_s22, 5  ;;  %v961_v27 = vld [vmem:[%s1481_s1 + $0x8] sm:$0xf0]  ;;  %vm392_vm3 = vcmask 130048   ;;  %vm329_vm4 = vcmask 883712   ;;  %vm317_vm5 = vcmask 891904  }
   0xd   : > { %s1108_s26 = scalar_lea.vmem %s1480_s0, %s1005_s23  ;;  %v964_v30 = vor.u32 %v1010_v26, %v961_v27  ;;  %v959_v38 = vld [vmem:[%s1481_s1] sm:$0xf]  ;;  %v1011_v39 = vld [vmem:[%s1481_s1 + $0x4] sm:$0xf0]  ;;  %vm305_vm6 = vcmask 900096   ;;  %vm293_vm7 = vcmask 1031168  }
   0xe   : > { %v947_v0 = vld [vmem:[%s1108_s26] sm:$0xf]  ;;  %v1008_v1 = vld [vmem:[%s1108_s26 + $0xc] sm:$0xf0]  ;;  %v1006_v2 = vld [vmem:[%s1108_s26 + $0x4] sm:$0xf]  ;;  %v960_v43 = vor.u32 %v1011_v39, %v959_v38 }
   0xf   : > { %v1113_v3 = vor.u32 %v1008_v1, %v947_v0  ;;  %v949_v4 = vld [vmem:[%s1108_s26 + $0x10] sm:$0xf0]  ;;  %v955_v6 = vld [vmem:[%s1108_s26 + $0x8] sm:$0xf]  ;;  %v1009_v7 = vld [vmem:[%s1108_s26 + $0x14] sm:$0xf0] }
  0x10   : > { %v1116_v5 = vor.u32 %v1006_v2, %v949_v4  ;;  %v1126_v8 = vor.u32 %v1009_v7, %v955_v6  ;;  %v1057_v46 = vmov 0   ;;  %v372_v47 = vld [vmem:[%s1482_s2 + $0x8] sm:$0xff]  ;;  %vm281_vm8 = vcmask 1039360   ;;  %v371_v49 = vld [vmem:[%s1482_s2] sm:$0xff]  ;;  %s1019_s20 = smul.u32 48, %s1488_s22 }
  0x11   : > { %347 = vrot.lane.b32.xlu2 %v1113_v3, %s1049_s27  ;;  %1039 = vset.pattern.permute.xlu1 %v1057_v46  ;;  %503 = vst [vmem:[#allocation2 + $0x18] sm:$0xff] %v1057_v46  ;;  %v486_v7 = vld [vmem:[%s1485_s5] sm:$0x7]  ;;  %vm531_vm9 = vcmask 1043608   ;;  %vm532_vm10 = vcmask 1047556   ;;  %vm522_vm11 = vcmask 154624  }
  0x12   : > { %337 = vrot.lane.b32.xlu1 %v1116_v5, %s1050_s28  ;;  %349 = vrot.lane.b32.xlu0 %v1116_v5, %s1049_s27  ;;  %500 = vst [vmem:[#allocation2] sm:$0xff] %v1057_v46  ;;  %vm533_vm12 = vmor %vm532_vm10, %vm531_vm9  ;;  %vm535_vm13 = vcmask 412672   ;;  %vm740_vm14 = vcmask 261120   ;;  %s1469_s25 = scalar_lea.vmem %s1486_s6, %s1019_s20 }
  0x13   : > { %1038 = vset.pattern.permute.xlu0 %v1057_v46  ;;  %501 = vst [vmem:[#allocation2 + $0x8] sm:$0xff] %v1057_v46  ;;  %1040 = vset.pattern.permute.xlu2 %v1057_v46 }
  0x14   : > { %502 = vst [vmem:[#allocation2 + $0x10] sm:$0xff] %v1057_v46 }
  0x19   : > { %325 = vrot.lane.b32.xlu2 %v1116_v5, %s1051_s29 }
  0x1a   : > { %339 = vrot.lane.b32.xlu1 %v1126_v8, %s1050_s28  ;;  %351 = vrot.lane.b32.xlu0 %v1126_v8, %s1049_s27 }
  0x21   : > { %313 = vrot.lane.b32.xlu2 %v1116_v5, %s1052_s30 }
  0x22   : > { %335 = vrot.lane.b32.xlu1 %v1113_v3, %s1050_s28  ;;  %327 = vrot.lane.b32.xlu0 %v1126_v8, %s1051_s29 }
  0x29   : > { %361 = vrot.lane.b32.xlu2 %v1116_v5, %s1053_s7 }
  0x2a   : > { %359 = vrot.lane.b32.xlu1 %v1113_v3, %s1053_s7  ;;  %315 = vrot.lane.b32.xlu0 %v1126_v8, %s1052_s30 }
  0x31   : > { %303 = vrot.lane.b32.xlu2 %v1126_v8, %s1054_s8 }
  0x32   : > { %301 = vrot.lane.b32.xlu1 %v1116_v5, %s1054_s8  ;;  %323 = vrot.lane.b32.xlu0 %v1113_v3, %s1051_s29 }
  0x39   : > { %291 = vrot.lane.b32.xlu2 %v1126_v8, %s1055_s9 }
  0x3a   : > { %289 = vrot.lane.b32.xlu1 %v1116_v5, %s1055_s9  ;;  %311 = vrot.lane.b32.xlu0 %v1113_v3, %s1052_s30 }
  0x41   : > { %279 = vrot.lane.b32.xlu2 %v1126_v8, %s1056_s10 }
  0x42   : > { %277 = vrot.lane.b32.xlu1 %v1116_v5, %s1056_s10  ;;  %299 = vrot.lane.b32.xlu0 %v1113_v3, %s1054_s8 }
  0x49   : > { %363 = vrot.lane.b32.xlu2 %v1126_v8, %s1053_s7 }
  0x4a   : > { %275 = vrot.lane.b32.xlu1 %v1113_v3, %s1056_s10  ;;  %287 = vrot.lane.b32.xlu0 %v1113_v3, %s1055_s9 }
  0x52   : > { %380 = vperm.xlu1 %1039, %v372_v47   ;;  %375 = vperm.xlu0 %1038, %v371_v49  }
  0x6b   : > { %v348_v9 = vpop.permute.xlu2 %347 }
  0x73   : > { %v326_v10 = vpop.permute.xlu2 %325 }
  0x7b   : > { %v314_v11 = vpop.permute.xlu2 %313 }
  0x83   : > { %v362_v12 = vpop.permute.xlu2 %361 }
  0x84   : > { %v338_v13 = vpop.permute.xlu1 %337  ;;  %v350_v14 = vpop.permute.xlu0 %349 }
  0x85   : > { %v1171_v15 = vsel %vm353_vm0, %v348_v9, %v350_v14 }
  0x86   : > { %396 = vmatpush.bf16.msra.mxu0 %v1171_v15 }
  0x8b   : > { %v1174_v16 = vpop.permute.xlu2 %303 }
  0x8c   : > { %v1176_v17 = vpop.permute.xlu1 %339  ;;  %v1178_v18 = vpop.permute.xlu0 %351 }
  0x8d   : > { %452 = vmatpush.bf16.msra.mxu1 %v1178_v18  ;;  %v1205_v29 = vsel %vm353_vm0, %v350_v14, %v1178_v18  ;;  %v343_v31 = vsel %vm341_vm1, %v338_v13, %v1176_v17 }
  0x91   : > { %453 = vmatpush.bf16.msra.mxu1 %v1176_v17 }
  0x93   : > { %v1182_v19 = vpop.permute.xlu2 %291 }
  0x94   : > { %v336_v20 = vpop.permute.xlu1 %335  ;;  %v1184_v21 = vpop.permute.xlu0 %327 }
  0x95   : > { %454 = vmatpush.bf16.msra.mxu1 %v1184_v21  ;;  %v1188_v22 = vsel %vm341_vm1, %v336_v20, %v338_v13  ;;  %v331_v37 = vsel %vm329_vm4, %v326_v10, %v1184_v21 }
  0x96   : > { %397 = vmatpush.bf16.msra.mxu0 %v1188_v22 }
  0x9b   : > { %v1191_v23 = vpop.permute.xlu2 %279 }
  0x9c   : > { %v360_v24 = vpop.permute.xlu1 %359  ;;  %v1193_v25 = vpop.permute.xlu0 %315 }
  0x9d   : > { %455 = vmatpush.bf16.msra.mxu1 %v1193_v25  ;;  %v366_v28 = vsel %vm365_vm2, %v360_v24, %v362_v12  ;;  %v319_v40 = vsel %vm317_vm5, %v314_v11, %v1193_v25 }
  0x9e   : > { %417 = vmatpush.bf16.msra.mxu2 %v366_v28 }
  0xa1   : > { %456 = vmatpush.bf16.msra.mxu1 %v1174_v16  ;;  %965 = vmatmul.msk.bf16.vlgmr.msra.gmra.mxu2 %vm392_vm3, %v964_v30 }
  0xa2   : > { %424 = vmatpush.bf16.msrb.mxu2 %v1205_v29 }
  0xa3   : > { %v1212_v32 = vpop.permute.xlu2 %363 }
  0xa4   : > { %v302_v33 = vpop.permute.xlu1 %301  ;;  %v324_v34 = vpop.permute.xlu0 %323  ;;  %v1216_v35 = vsel %vm365_vm2, %v362_v12, %v1212_v32 }
  0xa5   : > { %v330_v36 = vsel %vm329_vm4, %v324_v34, %v326_v10  ;;  %445 = vmatpush.bf16.msra.mxu3 %v1216_v35  ;;  %457 = vmatpush.bf16.msra.mxu1 %v1182_v19  ;;  %v307_v45 = vsel %vm305_vm6, %v302_v33, %v1174_v16 }
  0xa6   : > { %425 = vmatpush.bf16.msrb.mxu2 %v343_v31  ;;  %398 = vmatpush.bf16.msra.mxu0 %v330_v36 }
  0xa8   : > { %966 = vmatmul.msk.bf16.vlgmr.msra.gmra.mxu3 %vm392_vm3, %v964_v30 }
  0xa9   : > { %473 = vmatpush.bf16.msrb.mxu3 %v1212_v32  ;;  %458 = vmatpush.bf16.msra.mxu1 %v1191_v23 }
  0xaa   : > { %426 = vmatpush.bf16.msrb.mxu2 %v331_v37 }
  0xac   : > { %v290_v41 = vpop.permute.xlu1 %289  ;;  %v312_v42 = vpop.permute.xlu0 %311 }
  0xad   : > { %v318_v44 = vsel %vm317_vm5, %v312_v42, %v314_v11  ;;  %459 = vmatpush.bf16.msra.mxu1 %v1126_v8  ;;  %v295_v48 = vsel %vm293_vm7, %v290_v41, %v1182_v19  ;;  %v490_v11 = vperm.slane %v486_v7, 2 }
  0xae   : > { %427 = vmatpush.bf16.msrb.mxu2 %v319_v40  ;;  %399 = vmatpush.bf16.msra.mxu0 %v318_v44 }
  0xb0   : > { %460 = vmatmul.bf16.vlgmr.msra.gmra.mxu1 %v960_v43 }
  0xb2   : > { %428 = vmatpush.bf16.msrb.mxu2 %v307_v45 }
  0xb4   : > { %v278_v50 = vpop.permute.xlu1 %277  ;;  %v300_v51 = vpop.permute.xlu0 %299 }
  0xb5   : > { %v306_v52 = vsel %vm305_vm6, %v300_v51, %v302_v33  ;;  %v283_v53 = vsel %vm281_vm8, %v278_v50, %v1191_v23 }
  0xb6   : > { %429 = vmatpush.bf16.msrb.mxu2 %v295_v48  ;;  %400 = vmatpush.bf16.msra.mxu0 %v306_v52 }
  0xb8   : > { %967 = vmatmul.msk.bf16.vlgmr.msrb.gmra.mxu3 %vm392_vm3, %v964_v30  ;;  %v488_v30 = vperm.slane %v486_v7, 0 }
  0xba   : > { %430 = vmatpush.bf16.msrb.mxu2 %v283_v53 }
  0xbc   : > { %v288_v54 = vpop.permute.xlu0 %287  ;;  %v276_v56 = vpop.permute.xlu1 %275 }
  0xbd   : > { %v294_v55 = vsel %vm293_vm7, %v288_v54, %v290_v41  ;;  %v282_v57 = vsel %vm281_vm8, %v276_v56, %v278_v50  ;;  %v984_v41 = vld [vmem:[%s1108_s26 + $0x18] sm:$0xf0]  ;;  %v1013_v54 = vld [vmem:[#allocation2 + $0xc] sm:$0xf] }
  0xbe   : > { %431 = vmatpush.bf16.msrb.mxu2 %v1116_v5  ;;  %401 = vmatpush.bf16.msra.mxu0 %v294_v55 }
  0xc1   : > { %432 = vmatmul.bf16.vlgmr.msrb.gmra.mxu2 %v960_v43 }
  0xc2   : > { %778 = vmatpush.bf16.msra.mxu2 %v366_v28  ;;  %402 = vmatpush.bf16.msra.mxu0 %v282_v57 }
  0xc4   : > { %v381_v0 = vpop.permute.xlu1 %380  ;;  %v376_v2 = vpop.permute.xlu0 %375 }
  0xc6   : > { %779 = vmatpush.bf16.msra.mxu2 %v1171_v15  ;;  %403 = vmatpush.bf16.msra.mxu0 %v1113_v3 }
  0xc9   : > { %404 = vmatmul.bf16.vlgmr.msra.gmra.mxu0 %v960_v43 }
  0xca   : > { %800 = vmatpush.bf16.msrb.mxu2 %v343_v31  ;;  %758 = vmatpush.bf16.msrb.mxu0 %v1188_v22  ;;  %v489_v22 = vperm.slane %v486_v7, 1 }
  0xce   : > { %801 = vmatpush.bf16.msrb.mxu2 %v331_v37  ;;  %759 = vmatpush.bf16.msrb.mxu0 %v330_v36 }
  0xd2   : > { %802 = vmatpush.bf16.msrb.mxu2 %v319_v40  ;;  %760 = vmatpush.bf16.msrb.mxu0 %v318_v44  ;;  %v1007_v40 = vld [vmem:[%s1108_s26 + $0xc] sm:$0xf] }
  0xd6   : > { %803 = vmatpush.bf16.msrb.mxu2 %v307_v45  ;;  %761 = vmatpush.bf16.msrb.mxu0 %v306_v52  ;;  %v1263_v45 = vor.u32 %v1007_v40, %v984_v41 }
  0xda   : > { %804 = vmatpush.bf16.msrb.mxu2 %v295_v48  ;;  %762 = vmatpush.bf16.msrb.mxu0 %v294_v55  ;;  %v980_v55 = vld [vmem:[#allocation2 + $0x18] sm:$0xf0] }
  0xdb   : > { %v1271_v56 = vor.u32 %v1013_v54, %v980_v55 }
  0xde   : > { %805 = vmatpush.bf16.msrb.mxu2 %v283_v53  ;;  %763 = vmatpush.bf16.msrb.mxu0 %v282_v57 }
  0xe2   : > { %806 = vmatpush.bf16.msrb.mxu2 %v1116_v5  ;;  %764 = vmatpush.bf16.msrb.mxu0 %v1113_v3 }
 0x124   : > { %v419_v59 = vpop.f32.mrf.mxu2 }
 0x12b   : > { %v447_v58 = vpop.f32.mrf.mxu3 }
 0x12c   : > { %v421_v62 = vpop.f32.mrf.mxu2 }
 0x12d   : > { %v461_v61 = vpop.f32.mrf.mxu1 }
 0x12e   : > { %v462_v12 = vadd.f32 %v461_v61, %v376_v2 }
 0x133   : > { %v449_v60 = vpop.f32.mrf.mxu3 }
 0x135   : > { %v463_v1 = vpop.f32.mrf.mxu1 }
 0x136   : > { %v464_v4 = vadd.f32 %v463_v1, %v381_v0 }
 0x13b   : > { %v475_v63 = vpop.f32.mrf.mxu3 }
 0x13c   : > { %v476_v27 = vadd.f32 %v475_v63, %v462_v12 }
 0x13e   : > { %v482_v37 = vmax.f32 %v476_v27, 0.0 }
 0x140   : > { %v496_v48 = vmul.f32 %v490_v11, %v482_v37 }
 0x142   : > { %v505_v52 = vpack.c.bf16 %v496_v48, %v496_v48 }
 0x143   : > { %v477_v5 = vpop.f32.mrf.mxu3 }
 0x144   : > { %v433_v6 = vpop.f32.mrf.mxu2  ;;  %v478_v10 = vadd.f32 %v477_v5, %v464_v4 }
 0x145   : > { %v434_v9 = vadd.f32 %v433_v6, %v376_v2 }
 0x146   : > { %v485_v13 = vmax.f32 %v478_v10, 0.0  ;;  %v405_v14 = vpop.f32.mrf.mxu0 }
 0x147   : > { %v448_v3 = vadd.f32 %v447_v58, %v434_v9  ;;  %v406_v15 = vadd.f32 %v405_v14, %v376_v2 }
 0x148   : > { %v499_v24 = vmul.f32 %v490_v11, %v485_v13  ;;  %v714_v13 = vld [vmem:[%s1484_s4 + $0x8] sm:$0xff] }
 0x149   : > { %v481_v20 = vmax.f32 %v448_v3, 0.0  ;;  %v420_v26 = vadd.f32 %v419_v59, %v406_v15 }
 0x14a   : > { %v507_v31 = vpack.c.bf16 %v499_v24, %v499_v24 }
 0x14b   : > { %v480_v34 = vmax.f32 %v420_v26, 0.0  ;;  %v495_v36 = vmul.f32 %v489_v22, %v481_v20 }
 0x14c   : > { %v435_v28 = vpop.f32.mrf.mxu2  ;;  %518 = vrot.lane.b32.xlu0 %v507_v31, %s1058_s12 }
 0x14d   : > { %v436_v33 = vadd.f32 %v435_v28, %v381_v0  ;;  %v494_v39 = vmul.f32 %v488_v30, %v480_v34 }
 0x14e   : > { %v407_v42 = vpop.f32.mrf.mxu0 }
 0x14f   : > { %v450_v38 = vadd.f32 %v449_v60, %v436_v33  ;;  %v408_v43 = vadd.f32 %v407_v42, %v381_v0  ;;  %v504_v44 = vpack.c.bf16 %v495_v36, %v494_v39 }
 0x151   : > { %v484_v46 = vmax.f32 %v450_v38, 0.0  ;;  %v422_v47 = vadd.f32 %v421_v62, %v408_v43  ;;  %512 = vrot.lane.b32.xlu2 %v504_v44, %s1058_s12 }
 0x153   : > { %v483_v49 = vmax.f32 %v422_v47, 0.0  ;;  %v498_v50 = vmul.f32 %v489_v22, %v484_v46  ;;  %v998_v46 = vld [vmem:[%s1483_s3 + $0x8] sm:$0xf]  ;;  %v1018_v47 = vld [vmem:[%s1483_s3 + $0x10] sm:$0xf0] }
 0x154   : > { %697 = vrot.lane.b32.xlu0 %v1263_v45, %s1050_s28 }
 0x155   : > { %v497_v51 = vmul.f32 %v488_v30, %v483_v49 }
 0x157   : > { %v506_v53 = vpack.c.bf16 %v498_v50, %v497_v51  ;;  %v1380_v50 = vor.u32 %v1018_v47, %v998_v46 }
 0x159   : > { %516 = vrot.lane.b32.xlu1 %v506_v53, %s1058_s12  ;;  %514 = vrot.lane.b32.xlu2 %v505_v52, %s1058_s12 }
 0x15a   : > { %1000 = vmatmul.msk.bf16.vlgmr.msra.gmra.mxu2 %vm740_vm14, %v1380_v50 }
 0x15c   : > { %693 = vrot.lane.b32.xlu0 %v1263_v45, %s1051_s29 }
 0x161   : > { %652 = vrot.lane.b32.xlu1 %v1271_v56, %s1049_s27 }
 0x164   : > { %689 = vrot.lane.b32.xlu0 %v1263_v45, %s1052_s30 }
 0x169   : > { %638 = vrot.lane.b32.xlu1 %v1271_v56, %s1050_s28 }
 0x171   : > { %624 = vrot.lane.b32.xlu1 %v1271_v56, %s1051_s29 }
 0x1ab   : > { %v513_v57 = vpop.permute.xlu2 %512 }
 0x1ac   : > { %v520_v58 = vrot.slane %v513_v57, 4 }
 0x1ae   : > { %v523_v59 = vsel %vm522_vm11, %v520_v58, %v513_v57 }
 0x1af   : > { %534 = vst.msk [vmem:[#allocation2] sm:$0xff] %vm533_vm12, %v523_v59  ;;  %v990_v59 = vld [vmem:[%s1483_s3] sm:$0xf] }
 0x1b3   : > { %v515_v60 = vpop.permute.xlu2 %514 }
 0x1b4   : > { %v524_v61 = vsel %vm522_vm11, %v520_v58, %v515_v60  ;;  %v1017_v60 = vld [vmem:[%s1483_s3 + $0x8] sm:$0xf0] }
 0x1b5   : > { %536 = vst.msk [vmem:[#allocation2 + $0x8] sm:$0xf] %vm535_vm13, %v524_v61  ;;  %v1396_v61 = vor.u32 %v1017_v60, %v990_v59 }
 0x1b6   : > { %v1012_v4 = vld [vmem:[#allocation2 + $0x4] sm:$0xf]  ;;  %v970_v6 = vld [vmem:[#allocation2] sm:$0xf] }
 0x1bc   : > { %v978_v3 = vld [vmem:[#allocation2 + $0x8] sm:$0xf] }
 0x1be   : > { %v519_v0 = vpop.permute.xlu0 %518 }
 0x1c6   : > { %v1354_v15 = vpop.permute.xlu0 %697 }
 0x1cb   : > { %v517_v62 = vpop.permute.xlu1 %516 }
 0x1cc   : > { %v521_v63 = vrot.slane %v517_v62, 4 }
 0x1ce   : > { %v525_v1 = vsel %vm522_vm11, %v521_v63, %v517_v62  ;;  %v526_v2 = vsel %vm522_vm11, %v521_v63, %v519_v0  ;;  %v1360_v24 = vpop.permute.xlu0 %693 }
 0x1cf   : > { %537 = vst.msk [vmem:[#allocation2 + $0x10] sm:$0xff] %vm533_vm12, %v525_v1 }
 0x1d0   : > { %538 = vst.msk [vmem:[#allocation2 + $0x18] sm:$0xf] %vm535_vm13, %v526_v2 }
 0x1d3   : > { %v1352_v14 = vpop.permute.xlu1 %652 }
 0x1d6   : > { %v972_v7 = vld [vmem:[#allocation2 + $0x10] sm:$0xf0]  ;;  %v1014_v9 = vld [vmem:[#allocation2 + $0xc] sm:$0xf0]  ;;  %v1366_v28 = vpop.permute.xlu0 %689 }
 0x1d7   : > { %v1279_v5 = vor.u32 %v1014_v9, %v970_v6  ;;  %v1281_v10 = vor.u32 %v1012_v4, %v972_v7  ;;  %v1015_v11 = vld [vmem:[#allocation2 + $0x14] sm:$0xf0] }
 0x1d8   : > { %v1307_v12 = vor.u32 %v1015_v11, %v978_v3 }
 0x1d9   : > { %632 = vrot.lane.b32.xlu0 %v1279_v5, %s1050_s28  ;;  %646 = vrot.lane.b32.xlu1 %v1279_v5, %s1049_s27 }
 0x1da   : > { %648 = vrot.lane.b32.xlu2 %v1281_v10, %s1049_s27 }
 0x1db   : > { %v1358_v22 = vpop.permute.xlu1 %638 }
 0x1e1   : > { %620 = vrot.lane.b32.xlu0 %v1281_v10, %s1051_s29  ;;  %634 = vrot.lane.b32.xlu1 %v1281_v10, %s1050_s28 }
 0x1e2   : > { %618 = vrot.lane.b32.xlu2 %v1279_v5, %s1051_s29 }
 0x1e3   : > { %v1364_v27 = vpop.permute.xlu1 %624 }
 0x1e9   : > { %590 = vrot.lane.b32.xlu0 %v1279_v5, %s1054_s8  ;;  %604 = vrot.lane.b32.xlu1 %v1279_v5, %s1052_s30 }
 0x1ea   : > { %606 = vrot.lane.b32.xlu2 %v1281_v10, %s1052_s30 }
 0x1f1   : > { %578 = vrot.lane.b32.xlu0 %v1281_v10, %s1055_s9  ;;  %592 = vrot.lane.b32.xlu1 %v1281_v10, %s1054_s8 }
 0x1f2   : > { %576 = vrot.lane.b32.xlu2 %v1279_v5, %s1055_s9 }
 0x1f9   : > { %564 = vrot.lane.b32.xlu0 %v1281_v10, %s1056_s10  ;;  %650 = vrot.lane.b32.xlu1 %v1307_v12, %s1049_s27 }
 0x1fa   : > { %562 = vrot.lane.b32.xlu2 %v1279_v5, %s1056_s10 }
 0x201   : > { %608 = vrot.lane.b32.xlu0 %v1307_v12, %s1052_s30  ;;  %636 = vrot.lane.b32.xlu1 %v1307_v12, %s1050_s28 }
 0x202   : > { %596 = vrot.lane.b32.xlu2 %v1271_v56, %s1054_s8 }
 0x209   : > { %681 = vrot.lane.b32.xlu0 %v1263_v45, %s1055_s9  ;;  %610 = vrot.lane.b32.xlu1 %v1271_v56, %s1052_s30 }
 0x20a   : > { %622 = vrot.lane.b32.xlu2 %v1307_v12, %s1051_s29 }
 0x211   : > { %662 = vrot.lane.b32.xlu0 %v1281_v10, %s1053_s7  ;;  %685 = vrot.lane.b32.xlu1 %v1263_v45, %s1054_s8 }
 0x212   : > { %594 = vrot.lane.b32.xlu2 %v1307_v12, %s1054_s8 }
 0x219   : > { %705 = vrot.lane.b32.xlu0 %v1263_v45, %s1053_s7  ;;  %582 = vrot.lane.b32.xlu1 %v1271_v56, %s1055_s9 }
 0x21a   : > { %580 = vrot.lane.b32.xlu2 %v1307_v12, %s1055_s9 }
 0x221   : > { %701 = vrot.lane.b32.xlu0 %v1263_v45, %s1049_s27  ;;  %568 = vrot.lane.b32.xlu1 %v1271_v56, %s1056_s10 }
 0x222   : > { %566 = vrot.lane.b32.xlu2 %v1307_v12, %s1056_s10 }
 0x229   : > { %722 = vperm.xlu0 %1038, %v714_v13   ;;  %666 = vrot.lane.b32.xlu1 %v1271_v56, %s1053_s7 }
 0x22a   : > { %660 = vrot.lane.b32.xlu2 %v1279_v5, %s1053_s7 }
 0x232   : > { %677 = vrot.lane.b32.xlu2 %v1263_v45, %s1056_s10 }
 0x234   : > { %v649_v20 = vpop.permute.xlu2 %648 }
 0x23a   : > { %664 = vrot.lane.b32.xlu2 %v1307_v12, %s1053_s7 }
 0x23c   : > { %v619_v26 = vpop.permute.xlu2 %618 }
 0x244   : > { %v607_v30 = vpop.permute.xlu2 %606 }
 0x24b   : > { %v647_v31 = vpop.permute.xlu1 %646  ;;  %v633_v33 = vpop.permute.xlu0 %632 }
 0x24c   : > { %v654_v34 = vsel %vm353_vm0, %v647_v31, %v649_v20  ;;  %v577_v36 = vpop.permute.xlu2 %576 }
 0x24d   : > { %744 = vmatpush.bf16.msra.mxu3 %v654_v34 }
 0x253   : > { %v635_v37 = vpop.permute.xlu1 %634  ;;  %v621_v38 = vpop.permute.xlu0 %620 }
 0x254   : > { %v563_v39 = vpop.permute.xlu2 %562  ;;  %v640_v40 = vsel %vm341_vm1, %v633_v33, %v635_v37  ;;  %v626_v41 = vsel %vm329_vm4, %v619_v26, %v621_v38 }
 0x255   : > { %745 = vmatpush.bf16.msra.mxu3 %v640_v40 }
 0x259   : > { %746 = vmatpush.bf16.msra.mxu3 %v626_v41 }
 0x25b   : > { %v605_v42 = vpop.permute.xlu1 %604  ;;  %v591_v43 = vpop.permute.xlu0 %590 }
 0x25c   : > { %v1371_v44 = vpop.permute.xlu2 %596  ;;  %v612_v45 = vsel %vm317_vm5, %v605_v42, %v607_v30  ;;  %v691_v42 = vsel %vm317_vm5, %v1193_v25, %v1366_v28 }
 0x25d   : > { %747 = vmatpush.bf16.msra.mxu3 %v612_v45 }
 0x263   : > { %v593_v48 = vpop.permute.xlu1 %592  ;;  %v579_v49 = vpop.permute.xlu0 %578 }
 0x264   : > { %v623_v51 = vpop.permute.xlu2 %622  ;;  %v598_v52 = vsel %vm305_vm6, %v591_v43, %v593_v48  ;;  %v584_v53 = vsel %vm293_vm7, %v577_v36, %v579_v49 }
 0x265   : > { %748 = vmatpush.bf16.msra.mxu3 %v598_v52  ;;  %v627_v2 = vsel %vm329_vm4, %v621_v38, %v623_v51 }
 0x269   : > { %749 = vmatpush.bf16.msra.mxu3 %v584_v53 }
 0x26b   : > { %v651_v54 = vpop.permute.xlu1 %650  ;;  %v565_v55 = vpop.permute.xlu0 %564 }
 0x26c   : > { %v1386_v56 = vpop.permute.xlu2 %594  ;;  %v570_v57 = vsel %vm281_vm8, %v563_v39, %v565_v55  ;;  %v655_v58 = vsel %vm353_vm0, %v649_v20, %v651_v54  ;;  %v713_v39 = vld [vmem:[%s1484_s4] sm:$0xff] }
 0x26d   : > { %750 = vmatpush.bf16.msra.mxu3 %v570_v57  ;;  %786 = vmatpush.bf16.msrb.mxu1 %v655_v58 }
 0x26e   : > { %717 = vperm.xlu2 %1040, %v713_v39  }
 0x271   : > { %751 = vmatpush.bf16.msra.mxu3 %v1279_v5  ;;  %v1016_v5 = vld [vmem:[%s1483_s3 + $0x4] sm:$0xf] }
 0x273   : > { %v637_v62 = vpop.permute.xlu1 %636  ;;  %v609_v63 = vpop.permute.xlu0 %608 }
 0x274   : > { %v1400_v0 = vpop.permute.xlu2 %580  ;;  %752 = vmatmul.bf16.vlgmr.msra.gmra.mxu3 %v1396_v61  ;;  %v641_v1 = vsel %vm341_vm1, %v635_v37, %v637_v62  ;;  %v613_v7 = vsel %vm317_vm5, %v607_v30, %v609_v63  ;;  %v656_v30 = vsel %vm353_vm0, %v651_v54, %v1352_v14  ;;  %v642_v34 = vsel %vm341_vm1, %v637_v62, %v1358_v22 }
 0x275   : > { %820 = vmatpush.bf16.msrb.mxu3 %v1216_v35  ;;  %787 = vmatpush.bf16.msrb.mxu1 %v641_v1  ;;  %v599_v35 = vsel %vm305_vm6, %v593_v48, %v1386_v56  ;;  %v585_v13 = vsel %vm293_vm7, %v579_v49, %v1400_v0  ;;  %v699_v14 = vsel %vm341_vm1, %v1176_v17, %v1354_v15  ;;  %v781_v48 = vpop.f32.mrf.mxu2 }
 0x276   : > { %v628_v22 = vsel %vm329_vm4, %v623_v51, %v1364_v27  ;;  %v695_v17 = vsel %vm329_vm4, %v1184_v21, %v1360_v24  ;;  %v600_v21 = vsel %vm305_vm6, %v1386_v56, %v1371_v44 }
 0x279   : > { %821 = vmatpush.bf16.msrb.mxu3 %v1205_v29  ;;  %788 = vmatpush.bf16.msrb.mxu1 %v627_v2  ;;  %v992_v29 = vld [vmem:[%s1483_s3 + $0xc] sm:$0xf0] }
 0x27a   : > { %v995_v26 = vor.u32 %v1016_v5, %v992_v29 }
 0x27b   : > { %v682_v4 = vpop.permute.xlu0 %681  ;;  %v611_v9 = vpop.permute.xlu1 %610 }
 0x27c   : > { %v567_v6 = vpop.permute.xlu2 %566  ;;  %v683_v25 = vsel %vm293_vm7, %v1182_v19, %v682_v4 }
 0x27d   : > { %789 = vmatpush.bf16.msrb.mxu1 %v613_v7  ;;  %v571_v33 = vsel %vm281_vm8, %v565_v55, %v567_v6  ;;  %v783_v54 = vpop.f32.mrf.mxu2 }
 0x281   : > { %790 = vmatpush.bf16.msrb.mxu1 %v599_v35 }
 0x283   : > { %v663_v11 = vpop.permute.xlu0 %662  ;;  %v686_v31 = vpop.permute.xlu1 %685 }
 0x284   : > { %v661_v3 = vpop.permute.xlu2 %660  ;;  %1001 = vmatmul.msk.bf16.vlgmr.msrb.gmra.mxu3 %vm740_vm14, %v1380_v50 }
 0x285   : > { %v668_v20 = vsel %vm365_vm2, %v661_v3, %v663_v11  ;;  %791 = vmatpush.bf16.msrb.mxu1 %v585_v13 }
 0x286   : > { %765 = vmatpush.bf16.msrb.mxu0 %v668_v20 }
 0x289   : > { %766 = vmatmul.bf16.vlgmr.msrb.gmra.mxu0 %v995_v26  ;;  %792 = vmatpush.bf16.msrb.mxu1 %v571_v33 }
 0x28a   : > { %828 = vmatpush.bf16.msra.mxu0 %v656_v30 }
 0x28b   : > { %v706_v36 = vpop.permute.xlu0 %705 }
 0x28c   : > { %v678_v37 = vpop.permute.xlu2 %677  ;;  %v707_v38 = vsel %vm365_vm2, %v1212_v32, %v706_v36  ;;  %v583_v32 = vpop.permute.xlu1 %582 }
 0x28d   : > { %793 = vmatpush.bf16.msrb.mxu1 %v1281_v10  ;;  %862 = vmatpush.bf16.msra.mxu3 %v707_v38  ;;  %v614_v10 = vsel %vm317_vm5, %v609_v63, %v611_v9  ;;  %v586_v24 = vsel %vm293_vm7, %v1400_v0, %v583_v32  ;;  %v679_v44 = vsel %vm281_vm8, %v1191_v23, %v678_v37 }
 0x28e   : > { %829 = vmatpush.bf16.msra.mxu0 %v642_v34 }
 0x290   : > { %794 = vmatmul.bf16.vlgmr.msrb.gmra.mxu1 %v1396_v61 }
 0x291   : > { %842 = vmatpush.bf16.msra.mxu1 %v699_v14 }
 0x292   : > { %830 = vmatpush.bf16.msra.mxu0 %v628_v22 }
 0x293   : > { %v702_v15 = vpop.permute.xlu0 %701 }
 0x294   : > { %v665_v40 = vpop.permute.xlu2 %664  ;;  %v703_v41 = vsel %vm353_vm0, %v1178_v18, %v702_v15  ;;  %v687_v18 = vsel %vm305_vm6, %v1174_v16, %v686_v31  ;;  %v569_v43 = vpop.permute.xlu1 %568 }
 0x295   : > { %843 = vmatpush.bf16.msra.mxu1 %v695_v17  ;;  %v669_v27 = vsel %vm365_vm2, %v663_v11, %v665_v40  ;;  %863 = vmatpush.bf16.msra.mxu3 %v703_v41  ;;  %v572_v28 = vsel %vm281_vm8, %v567_v6, %v569_v43 }
 0x296   : > { %831 = vmatpush.bf16.msra.mxu0 %v614_v10  ;;  %807 = vmatpush.bf16.msrb.mxu2 %v669_v27 }
 0x298   : > { %1002 = vmatmul.msk.bf16.vlgmr.msra.gmra.mxu3 %vm740_vm14, %v1380_v50 }
 0x299   : > { %844 = vmatpush.bf16.msra.mxu1 %v691_v42  ;;  %808 = vmatmul.bf16.vlgmr.msrb.gmra.mxu2 %v995_v26 }
 0x29a   : > { %832 = vmatpush.bf16.msra.mxu0 %v600_v21 }
 0x29c   : > { %v667_v16 = vpop.permute.xlu1 %666 }
 0x29d   : > { %845 = vmatpush.bf16.msra.mxu1 %v687_v18  ;;  %v670_v45 = vsel %vm365_vm2, %v665_v40, %v667_v16 }
 0x29e   : > { %833 = vmatpush.bf16.msra.mxu0 %v586_v24 }
 0x2a1   : > { %846 = vmatpush.bf16.msra.mxu1 %v683_v25 }
 0x2a2   : > { %834 = vmatpush.bf16.msra.mxu0 %v572_v28 }
 0x2a5   : > { %847 = vmatpush.bf16.msra.mxu1 %v679_v44 }
 0x2a6   : > { %835 = vmatpush.bf16.msra.mxu0 %v1307_v12  ;;  %v723_v12 = vpop.permute.xlu0 %722 }
 0x2a9   : > { %836 = vmatmul.bf16.vlgmr.msra.gmra.mxu0 %v1396_v61  ;;  %848 = vmatpush.bf16.msra.mxu1 %v1126_v8 }
 0x2ad   : > { %849 = vmatpush.bf16.msra.mxu1 %v670_v45 }
 0x2b0   : > { %850 = vmatmul.bf16.vlgmr.msra.gmra.mxu1 %v995_v26 }
 0x2c8   : > { %v718_v46 = vpop.permute.xlu2 %717 }
 0x2f7   : > { %v753_v19 = vpop.f32.mrf.mxu3 }
 0x2f8   : > { %v754_v47 = vadd.f32 %v753_v19, %v718_v46 }
 0x2ff   : > { %v755_v51 = vpop.f32.mrf.mxu3 }
 0x300   : > { %v756_v52 = vadd.f32 %v755_v51, %v723_v12 }
 0x306   : > { %v767_v49 = vpop.f32.mrf.mxu0 }
 0x307   : > { %v768_v50 = vadd.f32 %v767_v49, %v754_v47  ;;  %v823_v59 = vpop.f32.mrf.mxu3 }
 0x309   : > { %v782_v23 = vadd.f32 %v781_v48, %v768_v50 }
 0x30b   : > { %v870_v8 = vmax.f32 %v782_v23, 0.0 }
 0x30d   : > { %876 = vst [vmem:[%s1469_s25] sm:$0xff] %v870_v8  ;;  %v795_v58 = vpop.f32.mrf.mxu1 }
 0x30e   : > { %v769_v53 = vpop.f32.mrf.mxu0  ;;  %v796_v60 = vadd.f32 %v795_v58, %v718_v46 }
 0x30f   : > { %v770_v55 = vadd.f32 %v769_v53, %v756_v52  ;;  %v825_v1 = vpop.f32.mrf.mxu3 }
 0x311   : > { %v784_v56 = vadd.f32 %v783_v54, %v770_v55 }
 0x313   : > { %v873_v57 = vmax.f32 %v784_v56, 0.0 }
 0x315   : > { %879 = vst [vmem:[%s1469_s25 + $0x18] sm:$0xff] %v873_v57  ;;  %v797_v0 = vpop.f32.mrf.mxu1 }
 0x316   : > { %v798_v4 = vadd.f32 %v797_v0, %v723_v12 }
 0x31b   : > { %v865_v11 = vpop.f32.mrf.mxu3 }
 0x31c   : > { %v809_v61 = vpop.f32.mrf.mxu2 }
 0x31d   : > { %v810_v62 = vadd.f32 %v809_v61, %v796_v60 }
 0x31f   : > { %v824_v63 = vadd.f32 %v823_v59, %v810_v62 }
 0x321   : > { %v871_v2 = vmax.f32 %v824_v63, 0.0 }
 0x323   : > { %877 = vst [vmem:[%s1469_s25 + $0x8] sm:$0xff] %v871_v2  ;;  %v867_v36 = vpop.f32.mrf.mxu3 }
 0x324   : > { %v811_v7 = vpop.f32.mrf.mxu2 }
 0x325   : > { %v812_v9 = vadd.f32 %v811_v7, %v798_v4 }
 0x326   : > { %v837_v6 = vpop.f32.mrf.mxu0 }
 0x327   : > { %v838_v35 = vadd.f32 %v837_v6, %v718_v46  ;;  %v826_v5 = vadd.f32 %v825_v1, %v812_v9 }
 0x329   : > { %v874_v29 = vmax.f32 %v826_v5, 0.0 }
 0x32b   : > { %880 = vst [vmem:[%s1469_s25 + $0x20] sm:$0xff] %v874_v29 }
 0x32d   : > { %v851_v3 = vpop.f32.mrf.mxu1 }
 0x32e   : > { %v852_v13 = vadd.f32 %v851_v3, %v838_v35  ;;  %v839_v26 = vpop.f32.mrf.mxu0 }
 0x32f   : > { %v840_v31 = vadd.f32 %v839_v26, %v723_v12 }
 0x330   : > { %v866_v20 = vadd.f32 %v865_v11, %v852_v13 }
 0x332   : > { %v872_v30 = vmax.f32 %v866_v20, 0.0 }
 0x334   : > { %878 = vst [vmem:[%s1469_s25 + $0x10] sm:$0xff] %v872_v30 }
 0x335   : > { %v853_v33 = vpop.f32.mrf.mxu1 }
 0x336   : > { %v854_v34 = vadd.f32 %v853_v33, %v840_v31 }
 0x338   : > { %v868_v37 = vadd.f32 %v867_v36, %v854_v34 }
 0x33a   : > { %v875_v38 = vmax.f32 %v868_v37, 0.0 }
 0x33c   : > { %881 = vst [vmem:[%s1469_s25 + $0x28] sm:$0xff] %v875_v38 }
 0x33d PF: > { %s16_s21 = sadd.s32 1, %s1047_s21  }
 0x33e   : > { %p13_p4 = scmp.ge.s32.totalorder %s16_s21, 4  }
 0x340   :  { %15 = sbr.rel (!%p13_p4) target bundleno = 1 (0x1), region = 74 }

</bundles_post_ra>
